<compile_context>
chip_gen: v6e
topology: v6e:2x2x1
jax: 0.10.0
libtpu: 0.0.40
codegen_flags: <defaults>
</compile_context>

<pallas_src>
import jax
import jax.numpy as jnp
from jax.experimental import pallas as pl
from jax.experimental.pallas import tpu as pltpu


# ------------------------------ Pallas kernel -------------------------------

def _transpose_last2_kernel(x_ref, o_ref):
    # x_ref : (bt, tn, tc) tile  ->  o_ref : (bt, tc, tn) tile.
    # Lowers to XLU (cross-lane) tile transposes; near-free next to the DMAs.
    o_ref[...] = jnp.swapaxes(x_ref[...], 1, 2)


def _tpu_generation():
    try:
        return jax.devices()[0].device_kind.lower()
    except Exception:
        return ""


def _pick_tile(dim, cap):
    """128-aligned tile capped at `cap`; full dim if the dim is small."""
    if dim <= 128:
        return dim                        # block == full array dim is always legal
    return min(cap, (dim // 128) * 128)   # multiple of 128 -> lane/sublane dense


def _transpose_last2(x3):
    """(B, N, C) -> (B, C, N) with one tiled, all-parallel pallas_call."""
    B, N, C = x3.shape
    itemsize = jnp.dtype(x3.dtype).itemsize
    is_v7 = "v7" in _tpu_generation()

    # Output lane dim is tn -> bias it large; tc stays 256-512.
    tn_cap = 1024 if is_v7 else 512
    tc_cap = 512 if itemsize >= 4 else 256
    tn = _pick_tile(N, tn_cap)
    tc = _pick_tile(C, tc_cap)

    # Fold batch into the block until each step moves target_bytes of input.
    target_bytes = (2 if is_v7 else 1) * 1024 * 1024
    tile_bytes = max(tn * tc * itemsize, 1)
    bt = max(1, min(B, target_bytes // tile_bytes))

    gb, gn, gc = pl.cdiv(B, bt), pl.cdiv(N, tn), pl.cdiv(C, tc)

    # Order grid axes by descending extent (logical order: n, c, b) so the
    # leading parallel axis is megacore-shardable even when B is 1 / tiny.
    extents = (gn, gc, gb)
    perm = sorted(range(3), key=lambda k: -extents[k])
    grid = tuple(extents[k] for k in perm)

    def _bnc(gidx):
        v = [None, None, None]            # n, c, b block indices
        for pos, k in enumerate(perm):
            v[k] = gidx[pos]
        return v[2], v[0], v[1]           # b, n, c

    def in_map(*gidx):
        b_i, n_i, c_i = _bnc(gidx)
        return (b_i, n_i, c_i)

    def out_map(*gidx):
        b_i, n_i, c_i = _bnc(gidx)
        return (b_i, c_i, n_i)

    return pl.pallas_call(
        _transpose_last2_kernel,
        out_shape=jax.ShapeDtypeStruct((B, C, N), x3.dtype),
        grid=grid,
        in_specs=[pl.BlockSpec((bt, tn, tc), in_map)],
        out_specs=pl.BlockSpec((bt, tc, tn), out_map),
        compiler_params=pltpu.CompilerParams(
            dimension_semantics=("parallel", "parallel", "parallel"),
            vmem_limit_bytes=32 * 1024 * 1024,
        ),
        cost_estimate=pl.CostEstimate(
            flops=0,
            transcendentals=0,
            bytes_accessed=2 * B * N * C * itemsize,
        ),
    )(x3)


# ------------------------------ module wrapper -------------------------------

def pallas_transpose(x, dims):
    """Pallas equivalent of `x.transpose(*dims)` (torchfcpe `Transpose`)."""
    assert len(dims) == 2, "dims == 2"
    nd = x.ndim
    d0, d1 = sorted(d % nd for d in dims)
    if d0 == d1:
        return x
    if (d0, d1) != (nd - 2, nd - 1):
        # TODO(synk): transposes not touching the last two axes are pure block
        # re-layouts (no lane/sublane data movement); torchfcpe only uses
        # Transpose((1, 2)) on (B, N, C), so that path is not implemented here.
        raise NotImplementedError("only last-two-axes transpose is implemented")

    lead = x.shape[:-2]
    batch = 1
    for s in lead:
        batch *= s
    n, c = x.shape[-2], x.shape[-1]
    y = _transpose_last2(x.reshape(batch, n, c))
    return y.reshape(*lead, c, n)


# ----------------------------------- main ------------------------------------

if __name__ == "__main__":
    key = jax.random.PRNGKey(0)
    k1, k2, k3 = jax.random.split(key, 3)

    # torchfcpe usage: Transpose((1, 2)) on a (batch, seq, channels) tensor.
    x_small = jax.random.normal(k1, (2, 8, 32), jnp.float32)
    y_small = jax.block_until_ready(pallas_transpose(x_small, (1, 2)))
    assert y_small.shape == (2, 32, 8)
    assert bool(jnp.array_equal(y_small, jnp.swapaxes(x_small, 1, 2)))

    # Exercises 128-aligned tiles with masked edge blocks (cdiv grid) on both
    # tiled axes plus batch folding into the block.
    x_mid = jax.random.normal(k2, (2, 192, 136), jnp.float32)
    y_mid = jax.block_until_ready(pallas_transpose(x_mid, (-1, -2)))
    assert y_mid.shape == (2, 136, 192)
    assert bool(jnp.array_equal(y_mid, jnp.swapaxes(x_mid, 1, 2)))

    # Higher-rank input: leading dims are flattened into the batch axis.
    x_4d = jax.random.normal(k3, (2, 3, 16, 24), jnp.float32)
    y_4d = jax.block_until_ready(pallas_transpose(x_4d, (2, 3)))
    assert y_4d.shape == (2, 3, 24, 16)
    assert bool(jnp.array_equal(y_4d, jnp.swapaxes(x_4d, 2, 3)))

    print("KERNEL_OK")
</pallas_src>

<mosaic_0001>
module attributes {stable_mosaic.version = 11 : i64} {
  func.func @_transpose_last2_kernel(%arg0: i32, %arg1: i32, %arg2: i32, %arg3: memref<2x8x32xf32, #tpu.memory_space<vmem>>, %arg4: memref<2x32x8xf32, #tpu.memory_space<vmem>>) attributes {dimension_semantics = [#tpu.dimension_semantics<parallel>, #tpu.dimension_semantics<parallel>, #tpu.dimension_semantics<parallel>], iteration_bounds = array<i64: 1, 1, 1>, scalar_prefetch = 0 : i64, scratch_operands = 0 : i64, tpu.core_type = #tpu.core_type<tc>, window_params = [{transform_indices = @transform_0, window_bounds = array<i64: 2, 8, 32>}, {transform_indices = @transform_1, window_bounds = array<i64: 2, 32, 8>}]} {
    %c0 = arith.constant 0 : index
    %c0_0 = arith.constant 0 : index
    %c0_1 = arith.constant 0 : index
    %0 = vector.load %arg3[%c0, %c0_0, %c0_1] : memref<2x8x32xf32, #tpu.memory_space<vmem>>, vector<2x8x32xf32>
    %1 = tpu.transpose %0, [0, 2, 1] : vector<2x8x32xf32> -> vector<2x32x8xf32>
    %c0_2 = arith.constant 0 : index
    %c0_3 = arith.constant 0 : index
    %c0_4 = arith.constant 0 : index
    %2 = vector.load %arg4[%c0_2, %c0_3, %c0_4] : memref<2x32x8xf32, #tpu.memory_space<vmem>>, vector<2x32x8xf32>
    tpu.vector_store %arg4[%c0_2, %c0_3, %c0_4], %1 {strides = array<i32>} : memref<2x32x8xf32, #tpu.memory_space<vmem>>, vector<2x32x8xf32>,
    return
  }
  func.func @transform_0(%arg0: i32, %arg1: i32, %arg2: i32) -> (i32, i32, i32) {
    %c0_i32 = arith.constant 0 : i32
    return %arg2, %arg0, %arg1 : i32, i32, i32
  }
  func.func @transform_1(%arg0: i32, %arg1: i32, %arg2: i32) -> (i32, i32, i32) {
    %c0_i32 = arith.constant 0 : i32
    return %arg2, %arg1, %arg0 : i32, i32, i32
  }
}

</mosaic_0001>

<bundles_post_ra>
// kernel: tpu_custom_call.1
= control target key start
LH: loop header
LB: loop body
LE: loop exit
PB: predicated region body
PF: predicated region fallthrough
CT: control target
= control target key end

     0   :  { %6 = vsyncpa [#allocation3], 0  ;;  %s128_s6 = smov [#allocation2]   ;;  %s176_s0 = inlined_call_operand.hbm [shape: f32[2,8,32], index: 0, kind: input, shape index: {}]   ;;  %s177_s1 = inlined_call_operand.vmem [shape: f32[2,32,8], index: 1, kind: output, shape index: {}]  }
   0x1   :  { %s12_s7 = sshll.u32 %s128_s6, 4  ;;  %s13_s7 = int_to_ptr.vmem [resolvable:$true] %s12_s7 }
   0x2   :  { %s114_s8 = scalar_lea.vmem %s13_s7, 256  ;;  %p119_p1 = scmp.lt.s32.totalorder %s13_s7, %s13_s7 }
   0x3   :  { %p115_p0 = scmp.ne.s32.totalorder %s13_s7, %s114_s8  ;;  %p120_p2 = scmp.lt.s32.totalorder %s114_s8, %s114_s8 }
   0x5   :  { %p121_p3 = por %p120_p2, %p119_p1 }
   0x7   :  { %p122_p4 = pnand %p121_p3, %p115_p0 }
   0x9   :  { %125 = shalt.err (!%p122_p4)
}
   0xa   :  { %s129_s9 = smov 128   ;;  %s130_s10 = smov 8  }
   0xb   :  { %18 = dma.hbm_to_vmem [thread:$0]  %s176_s0, 256, %s13_s7, [#allocation3], %s129_s9, %s129_s9, %s130_s10  }
   0xc   :  { %126 = dma.done.wait [#allocation3], 256  }
   0xd   :  { %127 = vsyncadd [#allocation3], 4294967040  ;;  %v22_v0 = vld [vmem:[#allocation2] sm:$0xff]  ;;  %v23_v1 = vld [vmem:[#allocation2 + $0x8] sm:$0xff]  ;;  %vm88_vm0 = vcmask 64512  }
   0xe   :  { %24 = vxpose.xlu0.b32.start.end [1/1] (short) (narrow) %v22_v0, 32 }
  0x1b   :  { %56 = vxpose.xlu0.b32.start.end [1/1] (short) (narrow) %v23_v1, 32 }
  0x8a   :  { %v40_v2 = vpop.trf.xlu0 }
  0x8b   :  { %89 = vst.msk [vmem:[%s177_s1] sm:$0xff] %vm88_vm0, %v40_v2 }
  0x8e   :  { %v41_v3 = vpop.trf.xlu0 }
  0x8f   :  { %90 = vst.msk [vmem:[%s177_s1 + $0x8] sm:$0xff] %vm88_vm0, %v41_v3 }
  0x92   :  { %v42_v4 = vpop.trf.xlu0 }
  0x93   :  { %91 = vst.msk [vmem:[%s177_s1 + $0x10] sm:$0xff] %vm88_vm0, %v42_v4 }
  0x96   :  { %v43_v5 = vpop.trf.xlu0 }
  0x97   :  { %92 = vst.msk [vmem:[%s177_s1 + $0x18] sm:$0xff] %vm88_vm0, %v43_v5 }
  0x9a   :  { %v72_v6 = vpop.trf.xlu0 }
  0x9b   :  { %93 = vst.msk [vmem:[%s177_s1 + $0x20] sm:$0xff] %vm88_vm0, %v72_v6 }
  0x9e   :  { %v73_v7 = vpop.trf.xlu0 }
  0x9f   :  { %94 = vst.msk [vmem:[%s177_s1 + $0x28] sm:$0xff] %vm88_vm0, %v73_v7 }
  0xa2   :  { %v74_v8 = vpop.trf.xlu0 }
  0xa3   :  { %95 = vst.msk [vmem:[%s177_s1 + $0x30] sm:$0xff] %vm88_vm0, %v74_v8 }
  0xa6   :  { %v75_v9 = vpop.trf.xlu0 }
  0xa7   :  { %96 = vst.msk [vmem:[%s177_s1 + $0x38] sm:$0xff] %vm88_vm0, %v75_v9 }
  0xa8   :  { %101 = vsyncpa [#allocation3], 1 }

</bundles_post_ra>
